<compile_context>
chip_gen: v7x
topology: tpu7x:2x2x1
jax: 0.10.0
libtpu: 0.0.40
codegen_flags: <defaults>
</compile_context>

<pallas_src>
import functools

import jax
import jax.numpy as jnp
from jax.experimental import pallas as pl
from jax.experimental.pallas import tpu as pltpu

NEG_SLOPE = 0.2   # PyG GATConv default negative_slope
NEG_INF = -1e30


def decoder_block_kernel(x_ref, bias_ref, wgat_ref, asrc_ref, adst_ref, bgat_ref,
                         w1_ref, b1_ref, w2_ref, b2_ref, out_ref, *, heads, cout):
    x = x_ref[...]                       # [N, Cin]
    bias = bias_ref[...]                 # [N, N]  additive mask (0 / -1e30)
    n, cin = x.shape

    # --- GATConv ---
    # Per-head projection as one batched MXU matmul: xp[h] = x @ W_gat[h]  -> [H, N, Cout]
    xb = jnp.broadcast_to(x, (heads, n, cin))
    xp = jnp.einsum("hnk,hkc->hnc", xb, wgat_ref[...],
                    preferred_element_type=jnp.float32)

    # Attention coefficients via folded matmuls (no per-head XLU reductions):
    #   a_src[h, j] = <att_src[h], W_gat[h] x_j> = (A_src x^T)[h, j]
    a_src = jnp.einsum("hk,nk->hn", asrc_ref[...], x,
                       preferred_element_type=jnp.float32)       # [H, N]
    a_dst = jnp.einsum("hk,nk->hn", adst_ref[...], x,
                       preferred_element_type=jnp.float32)       # [H, N]

    # logits[h, i, j] = LeakyReLU(a_dst[h,i] + a_src[h,j]) + mask_bias[i, j]
    logits = a_dst[:, :, None] + a_src[:, None, :]               # [H, N, N]
    logits = jnp.where(logits > 0, logits, NEG_SLOPE * logits)   # LeakyReLU
    logits = logits + bias[None, :, :]                           # additive mask

    # Softmax over source nodes j (every row has a self loop -> finite max,
    # masked entries give exp(~-1e30) == 0, so no re-mask needed).
    m = jnp.max(logits, axis=-1, keepdims=True)                  # [H, N, 1]
    p = jnp.exp(logits - m)                                      # [H, N, N]
    denom = jnp.sum(p, axis=-1, keepdims=True)                   # [H, N, 1] >= 1
    # Fold the 1/heads mean into the (EUP, approx) reciprocal.
    p = p * pl.reciprocal(denom * float(heads), approx=True)

    # Aggregate messages per head, then sum over heads (mean already folded).
    agg = jnp.einsum("hij,hjc->hic", p, xp,
                     preferred_element_type=jnp.float32)         # [H, N, Cout]
    gat = jnp.sum(agg, axis=0) + bgat_ref[...]                   # [N, Cout]
    gat = jnp.maximum(gat, 0.0)                                  # relu(conv(x, edge_index))

    # --- MLPBlock: relu(x + fcc2(relu(fcc1(x)))) ---
    h1 = jnp.dot(gat, w1_ref[...], preferred_element_type=jnp.float32) + b1_ref[...]
    h1 = jnp.maximum(h1, 0.0)
    y2 = jnp.dot(h1, w2_ref[...], preferred_element_type=jnp.float32) + b2_ref[...]
    out_ref[...] = jnp.maximum(gat + y2, 0.0)


def decoder_block(x, adj, params, *, heads, cout):
    n, cin = x.shape

    # One-time wrapper-side (XLA) preprocessing: head-major weights, folded
    # attention projections, additive adjacency mask.
    wgat_h = params["w_gat"].reshape(cin, heads, cout).transpose(1, 0, 2)   # [H, Cin, Cout]
    a_src_w = jnp.einsum("hkc,hc->hk", wgat_h, params["att_src"])           # [H, Cin]
    a_dst_w = jnp.einsum("hkc,hc->hk", wgat_h, params["att_dst"])           # [H, Cin]
    mask_bias = jnp.where(adj > 0, 0.0, NEG_INF).astype(jnp.float32)        # [N, N]

    kernel = functools.partial(decoder_block_kernel, heads=heads, cout=cout)
    vmem = pl.BlockSpec(memory_space=pltpu.MemorySpace.VMEM)
    args = (x, mask_bias, wgat_h, a_src_w, a_dst_w, params["b_gat"],
            params["w1"], params["b1"], params["w2"], params["b2"])
    return pl.pallas_call(
        kernel,
        out_shape=jax.ShapeDtypeStruct((n, cout), jnp.float32),
        in_specs=[vmem] * len(args),
        out_specs=vmem,
    )(*args)


def edge_index_to_adj(edge_index, num_nodes):
    """Dense adjacency mask with self loops: adj[dst, src] = 1."""
    src, dst = edge_index[0], edge_index[1]
    adj = jnp.zeros((num_nodes, num_nodes), jnp.float32)
    adj = adj.at[dst, src].set(1.0)
    adj = adj.at[jnp.arange(num_nodes), jnp.arange(num_nodes)].set(1.0)  # add_self_loops
    return adj


def reference(x, adj, params, *, heads, cout):
    """Pure-JAX reference (same math, different code path) for sanity checking."""
    xp = (x @ params["w_gat"]).reshape(x.shape[0], heads, cout)        # [N, H, C]
    a_src = jnp.einsum("nhc,hc->nh", xp, params["att_src"])
    a_dst = jnp.einsum("nhc,hc->nh", xp, params["att_dst"])
    logits = a_dst[:, None, :] + a_src[None, :, :]                     # [N(i), N(j), H]
    logits = jnp.where(logits > 0, logits, NEG_SLOPE * logits)
    logits = jnp.where(adj[:, :, None] > 0, logits, NEG_INF)
    p = jax.nn.softmax(logits, axis=1) * (adj[:, :, None] > 0)
    agg = jnp.einsum("ijh,jhc->ihc", p, xp).mean(axis=1) + params["b_gat"][0]
    gat = jnp.maximum(agg, 0.0)
    h1 = jnp.maximum(gat @ params["w1"] + params["b1"][0], 0.0)
    y2 = h1 @ params["w2"] + params["b2"][0]
    return jnp.maximum(gat + y2, 0.0)


if __name__ == "__main__":
    N, CIN, COUT, HEADS = 16, 8, 8, 12

    key = jax.random.PRNGKey(0)
    ks = jax.random.split(key, 10)

    params = {
        "w_gat":   0.2 * jax.random.normal(ks[0], (CIN, HEADS * COUT), jnp.float32),
        "att_src": 0.2 * jax.random.normal(ks[1], (HEADS, COUT), jnp.float32),
        "att_dst": 0.2 * jax.random.normal(ks[2], (HEADS, COUT), jnp.float32),
        "b_gat":   0.1 * jax.random.normal(ks[3], (1, COUT), jnp.float32),
        "w1":      0.2 * jax.random.normal(ks[4], (COUT, 2 * COUT), jnp.float32),
        "b1":      0.1 * jax.random.normal(ks[5], (1, 2 * COUT), jnp.float32),
        "w2":      0.2 * jax.random.normal(ks[6], (2 * COUT, COUT), jnp.float32),
        "b2":      0.1 * jax.random.normal(ks[7], (1, COUT), jnp.float32),
    }

    x = jax.random.normal(ks[8], (N, CIN), jnp.float32)

    # Deterministic small graph: a ring plus a few chords. edge_index is [2, E] (src, dst).
    ring_src = jnp.arange(N)
    ring_dst = (jnp.arange(N) + 1) % N
    chord_src = jnp.array([0, 3, 5, 7, 9, 12], dtype=jnp.int32)
    chord_dst = jnp.array([8, 11, 13, 2, 1, 4], dtype=jnp.int32)
    edge_index = jnp.stack([jnp.concatenate([ring_src, chord_src]),
                            jnp.concatenate([ring_dst, chord_dst])]).astype(jnp.int32)

    adj = edge_index_to_adj(edge_index, N)

    out = decoder_block(x, adj, params, heads=HEADS, cout=COUT)
    out = jax.block_until_ready(out)

    ref = reference(x, adj, params, heads=HEADS, cout=COUT)
    assert out.shape == (N, COUT)
    # Tolerance accounts for the approx (EUP) reciprocal in the softmax (~2^-12 rel err).
    assert jnp.allclose(out, ref, rtol=1e-3, atol=1e-3), "mismatch vs pure-JAX reference"

    print("KERNEL_OK")
</pallas_src>

<mosaic_0001>
module attributes {stable_mosaic.version = 11 : i64} {
  func.func @decoder_block_kernel(%arg0: memref<16x8xf32, #tpu.memory_space<vmem>>, %arg1: memref<16x16xf32, #tpu.memory_space<vmem>>, %arg2: memref<12x8x8xf32, #tpu.memory_space<vmem>>, %arg3: memref<12x8xf32, #tpu.memory_space<vmem>>, %arg4: memref<12x8xf32, #tpu.memory_space<vmem>>, %arg5: memref<1x8xf32, #tpu.memory_space<vmem>>, %arg6: memref<8x16xf32, #tpu.memory_space<vmem>>, %arg7: memref<1x16xf32, #tpu.memory_space<vmem>>, %arg8: memref<16x8xf32, #tpu.memory_space<vmem>>, %arg9: memref<1x8xf32, #tpu.memory_space<vmem>>, %arg10: memref<16x8xf32, #tpu.memory_space<vmem>>) attributes {dimension_semantics = [], scalar_prefetch = 0 : i64, scratch_operands = 0 : i64, tpu.core_type = #tpu.core_type<tc>} {
    %c0 = arith.constant 0 : index
    %c0_0 = arith.constant 0 : index
    %0 = vector.load %arg0[%c0, %c0_0] : memref<16x8xf32, #tpu.memory_space<vmem>>, vector<16x8xf32>
    %c0_1 = arith.constant 0 : index
    %c0_2 = arith.constant 0 : index
    %1 = vector.load %arg1[%c0_1, %c0_2] : memref<16x16xf32, #tpu.memory_space<vmem>>, vector<16x16xf32>
    %2 = vector.shape_cast %0 : vector<16x8xf32> to vector<1x16x8xf32>
    %3 = vector.broadcast %2 : vector<1x16x8xf32> to vector<12x16x8xf32>
    %c0_3 = arith.constant 0 : index
    %c0_4 = arith.constant 0 : index
    %c0_5 = arith.constant 0 : index
    %4 = vector.load %arg2[%c0_3, %c0_4, %c0_5] : memref<12x8x8xf32, #tpu.memory_space<vmem>>, vector<12x8x8xf32>
    "tpu.trace_start"() <{level = 10 : i32, message = "hnk,hkc->hnc"}> : () -> ()
    %cst = arith.constant dense<0.000000e+00> : vector<12x16x8xf32>
    %5 = tpu.matmul %3, %4, %cst {dimension_numbers = #tpu.dot_dimension_numbers<[2], [1], [1], [2], [0, 0, 0, 1, 1, 2], [0], [0]>} : vector<12x16x8xf32>, vector<12x8x8xf32>, vector<12x16x8xf32> -> vector<12x16x8xf32>
    "tpu.trace_stop"() : () -> ()
    %c0_6 = arith.constant 0 : index
    %c0_7 = arith.constant 0 : index
    %6 = vector.load %arg3[%c0_6, %c0_7] : memref<12x8xf32, #tpu.memory_space<vmem>>, vector<12x8xf32>
    "tpu.trace_start"() <{level = 10 : i32, message = "hk,nk->hn"}> : () -> ()
    %cst_8 = arith.constant dense<0.000000e+00> : vector<12x16xf32>
    %7 = tpu.matmul %6, %0, %cst_8 {dimension_numbers = #tpu.dot_dimension_numbers<[1], [1], [0], [0], [0, 0, 1, 0], [], []>} : vector<12x8xf32>, vector<16x8xf32>, vector<12x16xf32> -> vector<12x16xf32>
    "tpu.trace_stop"() : () -> ()
    %c0_9 = arith.constant 0 : index
    %c0_10 = arith.constant 0 : index
    %8 = vector.load %arg4[%c0_9, %c0_10] : memref<12x8xf32, #tpu.memory_space<vmem>>, vector<12x8xf32>
    "tpu.trace_start"() <{level = 10 : i32, message = "hk,nk->hn"}> : () -> ()
    %cst_11 = arith.constant dense<0.000000e+00> : vector<12x16xf32>
    %9 = tpu.matmul %8, %0, %cst_11 {dimension_numbers = #tpu.dot_dimension_numbers<[1], [1], [0], [0], [0, 0, 1, 0], [], []>} : vector<12x8xf32>, vector<16x8xf32>, vector<12x16xf32> -> vector<12x16xf32>
    "tpu.trace_stop"() : () -> ()
    %10 = vector.shape_cast %9 : vector<12x16xf32> to vector<12x16x1xf32>
    %11 = vector.shape_cast %7 : vector<12x16xf32> to vector<12x1x16xf32>
    %12 = vector.broadcast %10 : vector<12x16x1xf32> to vector<12x16x16xf32>
    %13 = vector.broadcast %11 : vector<12x1x16xf32> to vector<12x16x16xf32>
    %14 = arith.addf %12, %13 : vector<12x16x16xf32>
    %cst_12 = arith.constant 0.000000e+00 : f32
    %15 = vector.broadcast %cst_12 : f32 to vector<12x16x16xf32>
    %16 = arith.cmpf ogt, %14, %15 : vector<12x16x16xf32>
    %cst_13 = arith.constant 2.000000e-01 : f32
    %17 = vector.broadcast %cst_13 : f32 to vector<12x16x16xf32>
    %18 = arith.mulf %17, %14 : vector<12x16x16xf32>
    %19 = arith.select %16, %14, %18 : vector<12x16x16xi1>, vector<12x16x16xf32>
    %20 = vector.shape_cast %1 : vector<16x16xf32> to vector<1x16x16xf32>
    %21 = vector.broadcast %20 : vector<1x16x16xf32> to vector<12x16x16xf32>
    %22 = arith.addf %19, %21 : vector<12x16x16xf32>
    %cst_14 = arith.constant dense<0xFF800000> : vector<12x16xf32>
    %23 = vector.multi_reduction <maximumf>, %22, %cst_14 [2] : vector<12x16x16xf32> to vector<12x16xf32>
    %24 = vector.shape_cast %23 : vector<12x16xf32> to vector<12x16x1xf32>
    %25 = vector.broadcast %24 : vector<12x16x1xf32> to vector<12x16x16xf32>
    %26 = arith.subf %22, %25 : vector<12x16x16xf32>
    %27 = math.exp %26 : vector<12x16x16xf32>
    %cst_15 = arith.constant dense<0.000000e+00> : vector<12x16xf32>
    %28 = vector.multi_reduction <add>, %27, %cst_15 [2] : vector<12x16x16xf32> to vector<12x16xf32>
    %29 = vector.shape_cast %28 : vector<12x16xf32> to vector<12x16x1xf32>
    %cst_16 = arith.constant 1.200000e+01 : f32
    %30 = vector.broadcast %cst_16 : f32 to vector<12x16x1xf32>
    %31 = arith.mulf %29, %30 : vector<12x16x1xf32>
    %32 = tpu.reciprocal %31 {approx = true} : vector<12x16x1xf32> -> vector<12x16x1xf32>
    %33 = vector.broadcast %32 : vector<12x16x1xf32> to vector<12x16x16xf32>
    %34 = arith.mulf %27, %33 : vector<12x16x16xf32>
    "tpu.trace_start"() <{level = 10 : i32, message = "hij,hjc->hic"}> : () -> ()
    %cst_17 = arith.constant dense<0.000000e+00> : vector<12x16x8xf32>
    %35 = tpu.matmul %34, %5, %cst_17 {dimension_numbers = #tpu.dot_dimension_numbers<[2], [1], [1], [2], [0, 0, 0, 1, 1, 2], [0], [0]>} : vector<12x16x16xf32>, vector<12x16x8xf32>, vector<12x16x8xf32> -> vector<12x16x8xf32>
    "tpu.trace_stop"() : () -> ()
    %cst_18 = arith.constant dense<0.000000e+00> : vector<16x8xf32>
    %36 = vector.multi_reduction <add>, %35, %cst_18 [0] : vector<12x16x8xf32> to vector<16x8xf32>
    %c0_19 = arith.constant 0 : index
    %c0_20 = arith.constant 0 : index
    %37 = vector.load %arg5[%c0_19, %c0_20] : memref<1x8xf32, #tpu.memory_space<vmem>>, vector<1x8xf32>
    %38 = vector.broadcast %37 : vector<1x8xf32> to vector<16x8xf32>
    %39 = arith.addf %36, %38 : vector<16x8xf32>
    %cst_21 = arith.constant 0.000000e+00 : f32
    %40 = vector.broadcast %cst_21 : f32 to vector<16x8xf32>
    %41 = arith.maximumf %39, %40 : vector<16x8xf32>
    %c0_22 = arith.constant 0 : index
    %c0_23 = arith.constant 0 : index
    %42 = vector.load %arg6[%c0_22, %c0_23] : memref<8x16xf32, #tpu.memory_space<vmem>>, vector<8x16xf32>
    %cst_24 = arith.constant dense<0.000000e+00> : vector<16x16xf32>
    %43 = tpu.matmul %41, %42, %cst_24 {dimension_numbers = #tpu.dot_dimension_numbers<[1], [0], [0], [1], [0, 0, 1, 1], [], []>} : vector<16x8xf32>, vector<8x16xf32>, vector<16x16xf32> -> vector<16x16xf32>
    %c0_25 = arith.constant 0 : index
    %c0_26 = arith.constant 0 : index
    %44 = vector.load %arg7[%c0_25, %c0_26] : memref<1x16xf32, #tpu.memory_space<vmem>>, vector<1x16xf32>
    %45 = vector.broadcast %44 : vector<1x16xf32> to vector<16x16xf32>
    %46 = arith.addf %43, %45 : vector<16x16xf32>
    %cst_27 = arith.constant 0.000000e+00 : f32
    %47 = vector.broadcast %cst_27 : f32 to vector<16x16xf32>
    %48 = arith.maximumf %46, %47 : vector<16x16xf32>
    %c0_28 = arith.constant 0 : index
    %c0_29 = arith.constant 0 : index
    %49 = vector.load %arg8[%c0_28, %c0_29] : memref<16x8xf32, #tpu.memory_space<vmem>>, vector<16x8xf32>
    %cst_30 = arith.constant dense<0.000000e+00> : vector<16x8xf32>
    %50 = tpu.matmul %48, %49, %cst_30 {dimension_numbers = #tpu.dot_dimension_numbers<[1], [0], [0], [1], [0, 0, 1, 1], [], []>} : vector<16x16xf32>, vector<16x8xf32>, vector<16x8xf32> -> vector<16x8xf32>
    %c0_31 = arith.constant 0 : index
    %c0_32 = arith.constant 0 : index
    %51 = vector.load %arg9[%c0_31, %c0_32] : memref<1x8xf32, #tpu.memory_space<vmem>>, vector<1x8xf32>
    %52 = vector.broadcast %51 : vector<1x8xf32> to vector<16x8xf32>
    %53 = arith.addf %50, %52 : vector<16x8xf32>
    %54 = arith.addf %41, %53 : vector<16x8xf32>
    %cst_33 = arith.constant 0.000000e+00 : f32
    %55 = vector.broadcast %cst_33 : f32 to vector<16x8xf32>
    %56 = arith.maximumf %54, %55 : vector<16x8xf32>
    %c0_34 = arith.constant 0 : index
    %c0_35 = arith.constant 0 : index
    %57 = vector.load %arg10[%c0_34, %c0_35] : memref<16x8xf32, #tpu.memory_space<vmem>>, vector<16x8xf32>
    tpu.vector_store %arg10[%c0_34, %c0_35], %56 {strides = array<i32>} : memref<16x8xf32, #tpu.memory_space<vmem>>, vector<16x8xf32>,
    return
  }
}

</mosaic_0001>

<bundles_post_ra>
// kernel: tpu_custom_call.1
= control target key start
LH: loop header
LB: loop body
LE: loop exit
PB: predicated region body
PF: predicated region fallthrough
CT: control target
= control target key end

     0   :  { %vm51_vm0 = vcmask 64512   ;;  %v1124_v48 = vlaneseq  ;;  %v3513_v56 = vmov 1966171168   ;;  %vm1511_vm4 = vcmask 130048   ;;  %s4167_s2 = inlined_call_operand.vmem [shape: f32[12,8,8], index: 2, kind: input, shape index: {}]   ;;  %s4168_s0 = inlined_call_operand.vmem [shape: f32[16,8], index: 0, kind: input, shape index: {}]   ;;  %s4169_s4 = inlined_call_operand.vmem [shape: f32[12,8], index: 4, kind: input, shape index: {}]   ;;  %s4170_s3 = inlined_call_operand.vmem [shape: f32[12,8], index: 3, kind: input, shape index: {}]   ;;  %s4171_s1 = inlined_call_operand.vmem [shape: f32[16,16], index: 1, kind: input, shape index: {}]   ;;  %s4172_s6 = inlined_call_operand.vmem [shape: f32[8,16], index: 6, kind: input, shape index: {}]   ;;  %s4173_s5 = inlined_call_operand.vmem [shape: f32[1,8], index: 5, kind: input, shape index: {}]   ;;  %s4174_s8 = inlined_call_operand.vmem [shape: f32[16,8], index: 8, kind: input, shape index: {}]   ;;  %s4175_s7 = inlined_call_operand.vmem [shape: f32[1,16], index: 7, kind: input, shape index: {}]   ;;  %s4176_s9 = inlined_call_operand.vmem [shape: f32[1,8], index: 9, kind: input, shape index: {}]   ;;  %s4177_s10 = inlined_call_operand.vmem [shape: f32[16,8], index: 10, kind: output, shape index: {}]  }
   0x1   :  { %v40_v0 = vld [vmem:[%s4167_s2 + $0x8] sm:$0xff]  ;;  %v3575_v1 = vld [vmem:[%s4168_s0] sm:$0xff]  ;;  %v42_v3 = vld [vmem:[%s4167_s2 + $0x18] sm:$0xff]  ;;  %v1260_v57 = vunpack.c.l.s4 %v3513_v56 }
   0x2   :  { %v3580_v2 = vld [vmem:[%s4168_s0 + $0x8] sm:$0xff]  ;;  %3187 = vmatprep.subr.mxu1 %v40_v0  ;;  %3189 = vmatprep.mubr.msk.f32.mxu1 %vm51_vm0, %v3575_v1  ;;  %v39_v5 = vld [vmem:[%s4167_s2] sm:$0xff]  ;;  %v46_v6 = vld [vmem:[%s4167_s2 + $0x38] sm:$0xff]  ;;  %v3715_v54 = vshrl.u32 %v1124_v48, 7 }
   0x3   :  { %3188 = vmatpush3.msra.mxu1 %v40_v0  ;;  %v44_v4 = vld [vmem:[%s4167_s2 + $0x28] sm:$0xff]  ;;  %3184 = vmatprep.mubr.msk.f32.mxu0 %vm51_vm0, %v3575_v1  ;;  %v41_v7 = vld [vmem:[%s4167_s2 + $0x10] sm:$0xff]  ;;  %v43_v9 = vld [vmem:[%s4167_s2 + $0x20] sm:$0xff]  ;;  %v3352_v12 = vpack.c.bf16 %v3580_v2, %v3575_v1  ;;  %v1261_v61 = vunpack.c.0.s8 %v1260_v57 }
   0x4   :  { %3190 = vmatmul.mubr.msk.f32.vlgmr.msra.gmra.mrb[0].mxu1 %vm51_vm0, %v3580_v2  ;;  %3197 = vmatprep.subr.mxu1 %v42_v3  ;;  %v48_v8 = vld [vmem:[%s4167_s2 + $0x48] sm:$0xff]  ;;  %v50_v10 = vld [vmem:[%s4167_s2 + $0x58] sm:$0xff]  ;;  %v45_v11 = vld [vmem:[%s4167_s2 + $0x30] sm:$0xff]  ;;  %v1126_v60 = vsub.s32 0, %v3715_v54  ;;  %v1192_v57 = vsub.s32 6, %v3715_v54 }
   0x5   :  { %3198 = vmatpush3.msra.mxu1 %v42_v3  ;;  %3199 = vmatprep.mubr.msk.f32.mxu1 %vm51_vm0, %v3575_v1  ;;  %vm3643_vm1 = vmpackc.low %vm51_vm0, %vm51_vm0  ;;  %v47_v14 = vld [vmem:[%s4167_s2 + $0x40] sm:$0xff]  ;;  %v49_v15 = vld [vmem:[%s4167_s2 + $0x50] sm:$0xff] }
   0x6   :  { %3207 = vmatprep.subr.mxu1 %v44_v4  ;;  %3182 = vmatprep.subr.mxu0 %v39_v5  ;;  %v1041_v16 = vld [vmem:[%s4169_s4] sm:$0xff]  ;;  %v1042_v18 = vld [vmem:[%s4169_s4 + $0x8] sm:$0xf] }
   0x7   :  { %3183 = vmatpush3.msra.mxu0 %v39_v5  ;;  %v958_v17 = vld [vmem:[%s4170_s3] sm:$0xff]  ;;  %v959_v19 = vld [vmem:[%s4170_s3 + $0x8] sm:$0xf] }
   0x8   :  { %3200 = vmatmul.mubr.msk.f32.vlgmr.msra.gmra.mrb[2].mxu1 %vm51_vm0, %v3580_v2  ;;  %3185 = vmatmul.mubr.msk.f32.vlgmr.msra.gmra.mrb[0].mxu0 %vm51_vm0, %v3580_v2 }
   0x9   :  { %3208 = vmatpush3.msra.mxu1 %v44_v4  ;;  %3209 = vmatprep.mubr.msk.f32.mxu1 %vm51_vm0, %v3575_v1 }
   0xa   :  { %3217 = vmatprep.subr.mxu1 %v46_v6  ;;  %3192 = vmatprep.subr.mxu0 %v41_v7 }
   0xb   :  { %3193 = vmatpush3.msra.mxu0 %v41_v7  ;;  %3194 = vmatprep.mubr.msk.f32.mxu0 %vm51_vm0, %v3575_v1 }
   0xc   :  { %3210 = vmatmul.mubr.msk.f32.vlgmr.msra.gmra.mrb[4].mxu1 %vm51_vm0, %v3580_v2  ;;  %3195 = vmatmul.mubr.msk.f32.vlgmr.msra.gmra.mrb[2].mxu0 %vm51_vm0, %v3580_v2 }
   0xd   :  { %3218 = vmatpush3.msra.mxu1 %v46_v6  ;;  %3219 = vmatprep.mubr.msk.f32.mxu1 %vm51_vm0, %v3575_v1 }
   0xe   :  { %3227 = vmatprep.subr.mxu1 %v48_v8  ;;  %3202 = vmatprep.subr.mxu0 %v43_v9 }
   0xf   :  { %3203 = vmatpush3.msra.mxu0 %v43_v9  ;;  %3204 = vmatprep.mubr.msk.f32.mxu0 %vm51_vm0, %v3575_v1 }
  0x10   :  { %3220 = vmatmul.mubr.msk.f32.vlgmr.msra.gmra.mrb[6].mxu1 %vm51_vm0, %v3580_v2  ;;  %3205 = vmatmul.mubr.msk.f32.vlgmr.msra.gmra.mrb[4].mxu0 %vm51_vm0, %v3580_v2 }
  0x11   :  { %3228 = vmatpush3.msra.mxu1 %v48_v8  ;;  %3229 = vmatprep.mubr.msk.f32.mxu1 %vm51_vm0, %v3575_v1 }
  0x12   :  { %3237 = vmatprep.subr.mxu1 %v50_v10  ;;  %3212 = vmatprep.subr.mxu0 %v45_v11 }
  0x13   :  { %3213 = vmatpush3.msra.mxu0 %v45_v11  ;;  %3214 = vmatprep.mubr.msk.f32.mxu0 %vm51_vm0, %v3575_v1 }
  0x14   :  { %3230 = vmatmul.mubr.msk.f32.vlgmr.msra.gmra.mrb[8].mxu1 %vm51_vm0, %v3580_v2  ;;  %3215 = vmatmul.mubr.msk.f32.vlgmr.msra.gmra.mrb[6].mxu0 %vm51_vm0, %v3580_v2 }
  0x15   :  { %3238 = vmatpush3.msra.mxu1 %v50_v10  ;;  %3239 = vmatprep.mubr.msk.f32.mxu1 %vm51_vm0, %v3575_v1 }
  0x16   :  { %3360 = vmatprep.subr.msk.bf16.mxu1 %vm3643_vm1, %v3352_v12  ;;  %3222 = vmatprep.subr.mxu0 %v47_v14 }
  0x17   :  { %3223 = vmatpush3.msra.mxu0 %v47_v14  ;;  %3224 = vmatprep.mubr.msk.f32.mxu0 %vm51_vm0, %v3575_v1 }
  0x18   :  { %3240 = vmatmul.mubr.msk.f32.vlgmr.msra.gmra.mrb[10].mxu1 %vm51_vm0, %v3580_v2  ;;  %3232 = vmatprep.subr.mxu0 %v49_v15 }
  0x19   :  { %3253 = vmatprep.mubr.msk.f32.mxu1 %vm51_vm0, %v1041_v16  ;;  %3225 = vmatmul.mubr.msk.f32.vlgmr.msra.gmra.mrb[8].mxu0 %vm51_vm0, %v3580_v2 }
  0x1a   :  { %3233 = vmatpush3.msra.mxu0 %v49_v15  ;;  %3234 = vmatprep.mubr.msk.f32.mxu0 %vm51_vm0, %v3575_v1  ;;  %v1137_v1 = vsub.s32 1, %v3715_v54 }
  0x1b   :  { %3354 = vmatprep.subr.msk.bf16.mxu0 %vm3643_vm1, %v3352_v12 }
  0x1c   :  { %3363 = vmatpush3.bf16.xpose.msk.msra.mxu1 %vm3643_vm1, %v3352_v12 }
  0x1d   :  { %3235 = vmatmul.mubr.msk.f32.vlgmr.msra.gmra.mrb[10].mxu0 %vm51_vm0, %v3580_v2  ;;  %v1264_v2 = vsub.s32 %v1261_v61, %v3715_v54 }
  0x1e   :  { %3246 = vmatprep.mubr.msk.f32.mxu0 %vm51_vm0, %v958_v17 }
  0x21   :  { %3357 = vmatpush3.bf16.xpose.msk.msra.mxu0 %vm3643_vm1, %v3352_v12 }
  0x23   :  { %3254 = vmatmul.mubr.msk.f32.vlgmr.msra.gmra.mrb[12].mxu1 %vm51_vm0, %v1042_v18 }
  0x28   :  { %3247 = vmatmul.mubr.msk.f32.vlgmr.msra.gmra.mrb[12].mxu0 %vm51_vm0, %v959_v19  ;;  %v1148_v19 = vsub.s32 2, %v3715_v54 }
  0xd7   :  { %v3191_v20 = vpop.f32.mrb[0].mxu1 }
  0xd8   :  { %v199_v21 = vpop.f32.mrb[1].mxu1 }
  0xd9   :  { %v3368_v22 = vpack.c.bf16 %v3191_v20, %v199_v21 }
  0xdb   :  { %v3201_v23 = vpop.f32.mrb[2].mxu1  ;;  %3369 = vmatprep.subr.bf16.mxu1 %v3368_v22  ;;  %v3186_v24 = vpop.f32.mrb[0].mxu0 }
  0xdc   :  { %v349_v25 = vpop.f32.mrb[3].mxu1  ;;  %3371 = vmatpush3.bf16.msra.mxu1 %v3368_v22  ;;  %v124_v26 = vpop.f32.mrb[1].mxu0 }
  0xdd   :  { %v3695_v27 = vpack.c.bf16 %v3201_v23, %v349_v25  ;;  %v3364_v28 = vpack.c.bf16 %v3186_v24, %v124_v26 }
  0xdf   :  { %v3211_v29 = vpop.f32.mrb[4].mxu1  ;;  %3377 = vmatprep.subr.bf16.mxu1 %v3695_v27  ;;  %3365 = vmatprep.subr.bf16.mxu0 %v3364_v28  ;;  %v3196_v30 = vpop.f32.mrb[2].mxu0 }
  0xe0   :  { %v499_v31 = vpop.f32.mrb[5].mxu1  ;;  %3367 = vmatpush3.bf16.msra.mxu0 %v3364_v28  ;;  %v274_v32 = vpop.f32.mrb[3].mxu0 }
  0xe1   :  { %v3698_v33 = vpack.c.bf16 %v3211_v29, %v499_v31  ;;  %v3700_v34 = vpack.c.bf16 %v3196_v30, %v274_v32 }
  0xe3   :  { %v3221_v35 = vpop.f32.mrb[6].mxu1  ;;  %v3206_v36 = vpop.f32.mrb[4].mxu0  ;;  %3373 = vmatprep.subr.bf16.mxu0 %v3700_v34 }
  0xe4   :  { %v649_v37 = vpop.f32.mrb[7].mxu1  ;;  %v424_v38 = vpop.f32.mrb[5].mxu0 }
  0xe5   :  { %v3703_v39 = vpack.c.bf16 %v3221_v35, %v649_v37  ;;  %v3705_v40 = vpack.c.bf16 %v3206_v36, %v424_v38 }
  0xe7   :  { %v3231_v41 = vpop.f32.mrb[8].mxu1  ;;  %v3216_v42 = vpop.f32.mrb[6].mxu0 }
  0xe8   :  { %v799_v43 = vpop.f32.mrb[9].mxu1  ;;  %v574_v44 = vpop.f32.mrb[7].mxu0 }
  0xe9   :  { %v3707_v45 = vpack.c.bf16 %v3231_v41, %v799_v43  ;;  %v3709_v46 = vpack.c.bf16 %v3216_v42, %v574_v44 }
  0xeb   :  { %v3241_v47 = vpop.f32.mrb[10].mxu1 }
  0xec   :  { %v949_v49 = vpop.f32.mrb[11].mxu1  ;;  %v3226_v50 = vpop.f32.mrb[8].mxu0 }
  0xed   :  { %v3711_v51 = vpack.c.bf16 %v3241_v47, %v949_v49  ;;  %v724_v52 = vpop.f32.mrb[9].mxu0  ;;  %v1159_v47 = vsub.s32 3, %v3715_v54 }
  0xee   :  { %v3713_v53 = vpack.c.bf16 %v3226_v50, %v724_v52  ;;  %v1170_v50 = vsub.s32 4, %v3715_v54 }
  0xf0   :  { %v3236_v55 = vpop.f32.mrb[10].mxu0 }
  0xf1   :  { %v874_v58 = vpop.f32.mrb[11].mxu0 }
  0xf2   :  { %v3717_v59 = vpack.c.bf16 %v3236_v55, %v874_v58  ;;  %v1181_v55 = vsub.s32 5, %v3715_v54 }
  0xf6   :  { %v3720_v62 = vpop.f32.mrb[12].mxu1 }
  0xf7   :  { %v3722_v63 = vpop.f32.mrb[13].mxu1  ;;  %v1215_v0 = vrot.slane %v3720_v62, %v1126_v60  ;;  %v1226_v3 = vrot.slane %v3720_v62, %v1137_v1 }
  0xf8   :  { %v1138_v9 = vrot.slane %v3722_v63, %v1137_v1  ;;  %v1127_v12 = vrot.slane %v3722_v63, %v1126_v60  ;;  %v1149_v44 = vrot.slane %v3722_v63, %v1148_v19  ;;  %v1160_v49 = vrot.slane %v3722_v63, %v1159_v47 }
  0xf9   :  { %1221 = vbcast.lane.b32.xlu1 %v1215_v0, 264  ;;  %1217 = vbcast.lane.b32.xlu0 %v1215_v0, 256  ;;  %v1171_v52 = vrot.slane %v3722_v63, %v1170_v50  ;;  %v1182_v56 = vrot.slane %v3722_v63, %v1181_v55  ;;  %v1193_v58 = vrot.slane %v3722_v63, %v1192_v57 }
  0xfa   :  { %v1237_v0 = vrot.slane %v3720_v62, %v1148_v19  ;;  %v1248_v1 = vrot.slane %v3720_v62, %v1159_v47 }
  0xfb   :  { %v3248_v4 = vpop.f32.mrb[12].mxu0 }
  0xfc   :  { %v1313_v5 = vrot.slane %v3248_v4, %v1264_v2  ;;  %v1032_v6 = vpop.f32.mrb[13].mxu0 }
  0xfd   :  { %1232 = vbcast.lane.b32.xlu1 %v1226_v3, 264  ;;  %1228 = vbcast.lane.b32.xlu0 %v1226_v3, 256  ;;  %v1258_v7 = vcombine.high %v1032_v6, %v1032_v6  ;;  %v1265_v8 = vrot.slane %v1032_v6, %v1264_v2 }
  0xfe   :  { %v1314_v10 = vcombine.high %v1313_v5, %v1313_v5  ;;  %v1321_v11 = vrot.slane %v1313_v5, %v1264_v2 }
  0xff   :  { %v1272_v13 = vrot.slane %v1258_v7, %v1264_v2  ;;  %v1273_v14 = vcombine.high %v1265_v8, %v1265_v8  ;;  %v1281_v15 = vrot.slane %v1265_v8, %v1264_v2 }
 0x100   :  { %v1366_v16 = vrot.slane %v1321_v11, %v1126_v60  ;;  %v1328_v17 = vrot.slane %v1314_v10, %v1264_v2  ;;  %v1329_v18 = vcombine.high %v1321_v11, %v1321_v11 }
 0x101   :  { %1140 = vbcast.lane.b32.xlu1 %v1138_v9, 256  ;;  %1129 = vbcast.lane.b32.xlu0 %v1127_v12, 256  ;;  %v1274_v20 = vcombine.high %v1272_v13, %v1272_v13  ;;  %v1295_v21 = vrot.slane %v1273_v14, %v1264_v2  ;;  %v3731_v22 = vrot.slane %v1281_v15, %v1126_v60 }
 0x102   :  { %v3733_v23 = vrot.slane %v1328_v17, %v1126_v60  ;;  %v1303_v24 = vcombine.high %v1281_v15, %v1281_v15  ;;  %v1288_v25 = vrot.slane %v1272_v13, %v1264_v2  ;;  %v3735_v26 = vrot.slane %v1329_v18, %v1126_v60 }
 0x103   :  { %v3737_v28 = vrot.slane %v1295_v21, %v1126_v60  ;;  %v1305_v29 = vcombine.high %v1295_v21, %v1295_v21  ;;  %v1302_v30 = vrot.slane %v1274_v20, %v1264_v2  ;;  %v1330_v31 = vcombine.high %v1328_v17, %v1328_v17 }
 0x104   :  { %v3739_v32 = vrot.slane %v1303_v24, %v1126_v60  ;;  %v3741_v35 = vrot.slane %v1288_v25, %v1126_v60  ;;  %v1304_v36 = vcombine.high %v1288_v25, %v1288_v25 }
 0x105   :  { %1144 = vbcast.lane.b32.xlu1 %v1138_v9, 264  ;;  %1133 = vbcast.lane.b32.xlu0 %v1127_v12, 264  ;;  %v3743_v37 = vrot.slane %v1305_v29, %v1126_v60  ;;  %v3745_v38 = vrot.slane %v1302_v30, %v1126_v60  ;;  %v1306_v41 = vcombine.high %v1302_v30, %v1302_v30 }
 0x106   :  { %v3747_v42 = vrot.slane %v1304_v36, %v1126_v60  ;;  %v3749_v43 = vrot.slane %v1330_v31, %v1126_v60 }
 0x107   :  { %v3753_v48 = vrot.slane %v1306_v41, %v1126_v60  ;;  %v1203_v60 = vsub.s32 7, %v3715_v54  ;;  %v3769_v54 = vld [vmem:[%s4171_s1 + $0x8] sm:$0xff] }
 0x109   :  { %1155 = vbcast.lane.b32.xlu1 %v1149_v44, 264  ;;  %1151 = vbcast.lane.b32.xlu0 %v1149_v44, 256  ;;  %v1204_v61 = vrot.slane %v3722_v63, %v1203_v60  ;;  %v3774_v63 = vld [vmem:[%s4171_s1] sm:$0xff] }
 0x10d   :  { %1166 = vbcast.lane.b32.xlu1 %v1160_v49, 264  ;;  %1162 = vbcast.lane.b32.xlu0 %v1160_v49, 256 }
 0x111   :  { %1177 = vbcast.lane.b32.xlu1 %v1171_v52, 264  ;;  %1173 = vbcast.lane.b32.xlu0 %v1171_v52, 256 }
 0x115   :  { %1188 = vbcast.lane.b32.xlu1 %v1182_v56, 264  ;;  %1184 = vbcast.lane.b32.xlu0 %v1182_v56, 256 }
 0x119   :  { %1199 = vbcast.lane.b32.xlu1 %v1193_v58, 264  ;;  %1195 = vbcast.lane.b32.xlu0 %v1193_v58, 256 }
 0x11d   :  { %1210 = vbcast.lane.b32.xlu1 %v1204_v61, 264  ;;  %1206 = vbcast.lane.b32.xlu0 %v1204_v61, 256 }
 0x121   :  { %1243 = vbcast.lane.b32.xlu1 %v1237_v0, 264  ;;  %1239 = vbcast.lane.b32.xlu0 %v1237_v0, 256 }
 0x125   :  { %1254 = vbcast.lane.b32.xlu1 %v1248_v1, 264  ;;  %1250 = vbcast.lane.b32.xlu0 %v1248_v1, 256 }
 0x16b   :  { %v1222_v2 = vpop.permute.xlu1 %1221  ;;  %v1218_v3 = vpop.permute.xlu0 %1217 }
 0x16c   :  { %v1408_v4 = vadd.f32 %v1366_v16, %v1222_v2  ;;  %v1407_v5 = vadd.f32 %v1366_v16, %v1218_v3 }
 0x16e   :  { %vm1432_vm2 = vcmp.gt.f32.partialorder %v1408_v4, 0.0  ;;  %v1456_v6 = vmul.f32 0.2, %v1408_v4  ;;  %vm1431_vm3 = vcmp.gt.f32.partialorder %v1407_v5, 0.0  ;;  %v1455_v62 = vmul.f32 0.2, %v1407_v5 }
 0x16f   :  { %v1233_v7 = vpop.permute.xlu1 %1232  ;;  %v1229_v8 = vpop.permute.xlu0 %1228 }
 0x170   :  { %v1410_v9 = vadd.f32 %v3733_v23, %v1233_v7  ;;  %v1409_v10 = vadd.f32 %v3733_v23, %v1229_v8  ;;  %v1480_v11 = vsel %vm1432_vm2, %v1408_v4, %v1456_v6  ;;  %v1479_v12 = vsel %vm1431_vm3, %v1407_v5, %v1455_v62 }
 0x171   :  { %v3779_v13 = vadd.f32 %v1480_v11, %v3769_v54  ;;  %v3782_v14 = vadd.f32 %v1479_v12, %v3774_v63 }
 0x172   :  { %vm1434_vm5 = vcmp.gt.f32.partialorder %v1410_v9, 0.0  ;;  %v1458_v15 = vmul.f32 0.2, %v1410_v9  ;;  %vm1433_vm6 = vcmp.gt.f32.partialorder %v1409_v10, 0.0  ;;  %v1457_v16 = vmul.f32 0.2, %v1409_v10 }
 0x173   :  { %v1141_v17 = vpop.permute.xlu1 %1140  ;;  %v1130_v18 = vpop.permute.xlu0 %1129  ;;  %v1563_v19 = vsel %vm1511_vm4, %v3779_v13, -inf  ;;  %v1560_v20 = vsel %vm1511_vm4, %v3782_v14, -inf }
 0x174   :  { %v1393_v21 = vadd.f32 %v3737_v28, %v1141_v17  ;;  %v1391_v23 = vadd.f32 %v3731_v22, %v1130_v18  ;;  %1564 = vmax.xlane.f32.xlu0 %v1563_v19  ;;  %1561 = vmax.xlane.f32.xlu1 %v1560_v20  ;;  %v1482_v24 = vsel %vm1434_vm5, %v1410_v9, %v1458_v15 }
 0x175   :  { %v3791_v25 = vadd.f32 %v1482_v24, %v3769_v54  ;;  %v1481_v29 = vsel %vm1433_vm6, %v1409_v10, %v1457_v16 }
 0x176   :  { %vm1417_vm7 = vcmp.gt.f32.partialorder %v1393_v21, 0.0  ;;  %v1441_v30 = vmul.f32 0.2, %v1393_v21  ;;  %vm1415_vm8 = vcmp.gt.f32.partialorder %v1391_v23, 0.0  ;;  %v1439_v31 = vmul.f32 0.2, %v1391_v23 }
 0x177   :  { %v1145_v36 = vpop.permute.xlu1 %1144  ;;  %v1134_v41 = vpop.permute.xlu0 %1133  ;;  %v1569_v44 = vsel %vm1511_vm4, %v3791_v25, -inf  ;;  %v3796_v47 = vadd.f32 %v1481_v29, %v3774_v63 }
 0x178   :  { %v1394_v49 = vadd.f32 %v3737_v28, %v1145_v36  ;;  %v1392_v50 = vadd.f32 %v3731_v22, %v1134_v41  ;;  %1570 = vmax.xlane.f32.xlu0 %v1569_v44  ;;  %v1463_v52 = vsel %vm1415_vm8, %v1391_v23, %v1439_v31  ;;  %v1465_v55 = vsel %vm1417_vm7, %v1393_v21, %v1441_v30 }
 0x179   :  { %v1566_v56 = vsel %vm1511_vm4, %v3796_v47, -inf  ;;  %v3803_v57 = vadd.f32 %v1463_v52, %v3774_v63  ;;  %v3808_v22 = vadd.f32 %v1465_v55, %v3774_v63 }
 0x17a   :  { %vm1418_vm9 = vcmp.gt.f32.partialorder %v1394_v49, 0.0  ;;  %v1442_v58 = vmul.f32 0.2, %v1394_v49  ;;  %vm1416_vm10 = vcmp.gt.f32.partialorder %v1392_v50, 0.0  ;;  %v1440_v60 = vmul.f32 0.2, %v1392_v50  ;;  %1567 = vmax.xlane.f32.xlu1 %v1566_v56 }
 0x17b   :  { %v1156_v61 = vpop.permute.xlu1 %1155  ;;  %v1152_v0 = vpop.permute.xlu0 %1151  ;;  %v1512_v28 = vsel %vm1511_vm4, %v3803_v57, -inf  ;;  %v1518_v10 = vsel %vm1511_vm4, %v3808_v22, -inf }
 0x17c   :  { %v1396_v1 = vadd.f32 %v3739_v32, %v1156_v61  ;;  %v1395_v2 = vadd.f32 %v3739_v32, %v1152_v0  ;;  %1513 = vmax.xlane.f32.xlu0 %v1512_v28  ;;  %v1464_v3 = vsel %vm1416_vm10, %v1392_v50, %v1440_v60  ;;  %v1466_v4 = vsel %vm1418_vm9, %v1394_v49, %v1442_v58 }
 0x17d   :  { %v3813_v5 = vadd.f32 %v1464_v3, %v3769_v54  ;;  %v3820_v32 = vadd.f32 %v1466_v4, %v3769_v54 }
 0x17e   :  { %vm1420_vm11 = vcmp.gt.f32.partialorder %v1396_v1, 0.0  ;;  %v1444_v6 = vmul.f32 0.2, %v1396_v1  ;;  %vm1419_vm12 = vcmp.gt.f32.partialorder %v1395_v2, 0.0  ;;  %v1443_v62 = vmul.f32 0.2, %v1395_v2 }
 0x17f   :  { %v1167_v7 = vpop.permute.xlu1 %1166  ;;  %v1163_v8 = vpop.permute.xlu0 %1162  ;;  %v1515_v9 = vsel %vm1511_vm4, %v3813_v5, -inf  ;;  %v1521_v24 = vsel %vm1511_vm4, %v3820_v32, -inf }
 0x180   :  { %v1398_v11 = vadd.f32 %v3743_v37, %v1167_v7  ;;  %v1397_v12 = vadd.f32 %v3743_v37, %v1163_v8  ;;  %1516 = vmax.xlane.f32.xlu1 %v1515_v9  ;;  %1519 = vmax.xlane.f32.xlu0 %v1518_v10  ;;  %v1467_v15 = vsel %vm1419_vm12, %v1395_v2, %v1443_v62 }
 0x181   :  { %v3825_v16 = vadd.f32 %v1467_v15, %v3774_v63  ;;  %v1468_v17 = vsel %vm1420_vm11, %v1396_v1, %v1444_v6 }
 0x182   :  { %vm1422_vm13 = vcmp.gt.f32.partialorder %v1398_v11, 0.0  ;;  %v1446_v18 = vmul.f32 0.2, %v1398_v11  ;;  %vm1421_vm14 = vcmp.gt.f32.partialorder %v1397_v12, 0.0  ;;  %v1445_v19 = vmul.f32 0.2, %v1397_v12 }
 0x183   :  { %v1178_v20 = vpop.permute.xlu1 %1177  ;;  %v1174_v21 = vpop.permute.xlu0 %1173  ;;  %v1524_v23 = vsel %vm1511_vm4, %v3825_v16, -inf  ;;  %v3832_v37 = vadd.f32 %v1468_v17, %v3769_v54 }
 0x184   :  { %v1400_v29 = vadd.f32 %v3741_v35, %v1178_v20  ;;  %v1399_v30 = vadd.f32 %v3741_v35, %v1174_v21  ;;  %1525 = vmax.xlane.f32.xlu1 %v1524_v23  ;;  %1522 = vmax.xlane.f32.xlu0 %v1521_v24  ;;  %v1469_v31 = vsel %vm1421_vm14, %v1397_v12, %v1445_v19 }
 0x185   :  { %v3837_v36 = vadd.f32 %v1469_v31, %v3774_v63  ;;  %v1470_v41 = vsel %vm1422_vm13, %v1398_v11, %v1446_v18  ;;  %v1527_v55 = vsel %vm1511_vm4, %v3832_v37, -inf }
 0x186   :  { %vm1424_vm15 = vcmp.gt.f32.partialorder %v1400_v29, 0.0  ;;  %v1448_v44 = vmul.f32 0.2, %v1400_v29  ;;  %vm1423_vm1 = vcmp.gt.f32.partialorder %v1399_v30, 0.0  ;;  %v1447_v49 = vmul.f32 0.2, %v1399_v30 }
 0x187   :  { %v1189_v50 = vpop.permute.xlu1 %1188  ;;  %v1185_v52 = vpop.permute.xlu0 %1184  ;;  %v1530_v56 = vsel %vm1511_vm4, %v3837_v36, -inf  ;;  %v3844_v35 = vadd.f32 %v1470_v41, %v3769_v54 }
 0x188   :  { %v1402_v58 = vadd.f32 %v3745_v38, %v1189_v50  ;;  %v1401_v60 = vadd.f32 %v3745_v38, %v1185_v52  ;;  %1528 = vmax.xlane.f32.xlu0 %v1527_v55  ;;  %1531 = vmax.xlane.f32.xlu1 %v1530_v56  ;;  %v1471_v61 = vsel %vm1423_vm1, %v1399_v30, %v1447_v49 }
 0x189   :  { %v3849_v0 = vadd.f32 %v1471_v61, %v3774_v63  ;;  %v1472_v28 = vsel %vm1424_vm15, %v1400_v29, %v1448_v44  ;;  %v1533_v6 = vsel %vm1511_vm4, %v3844_v35, -inf }
 0x18a   :  { %vm1426_vm2 = vcmp.gt.f32.partialorder %v1402_v58, 0.0  ;;  %v1450_v1 = vmul.f32 0.2, %v1402_v58  ;;  %vm1425_vm3 = vcmp.gt.f32.partialorder %v1401_v60, 0.0  ;;  %v1449_v2 = vmul.f32 0.2, %v1401_v60 }
 0x18b   :  { %v1200_v3 = vpop.permute.xlu1 %1199  ;;  %v1196_v4 = vpop.permute.xlu0 %1195  ;;  %v1536_v62 = vsel %vm1511_vm4, %v3849_v0, -inf  ;;  %v3856_v38 = vadd.f32 %v1472_v28, %v3769_v54 }
 0x18c   :  { %v1404_v7 = vadd.f32 %v3747_v42, %v1200_v3  ;;  %v1403_v8 = vadd.f32 %v3747_v42, %v1196_v4  ;;  %1534 = vmax.xlane.f32.xlu0 %v1533_v6  ;;  %1537 = vmax.xlane.f32.xlu1 %v1536_v62  ;;  %v1473_v9 = vsel %vm1425_vm3, %v1401_v60, %v1449_v2 }
 0x18d   :  { %v3861_v10 = vadd.f32 %v1473_v9, %v3774_v63  ;;  %v1474_v11 = vsel %vm1426_vm2, %v1402_v58, %v1450_v1  ;;  %v1539_v19 = vsel %vm1511_vm4, %v3856_v38, -inf }
 0x18e   :  { %vm1428_vm5 = vcmp.gt.f32.partialorder %v1404_v7, 0.0  ;;  %v1452_v12 = vmul.f32 0.2, %v1404_v7  ;;  %vm1427_vm6 = vcmp.gt.f32.partialorder %v1403_v8, 0.0  ;;  %v1451_v15 = vmul.f32 0.2, %v1403_v8 }
 0x18f   :  { %v1211_v17 = vpop.permute.xlu1 %1210  ;;  %v1207_v18 = vpop.permute.xlu0 %1206  ;;  %v1542_v20 = vsel %vm1511_vm4, %v3861_v10, -inf  ;;  %v3868_v42 = vadd.f32 %v1474_v11, %v3769_v54 }
 0x190   :  { %v1406_v21 = vadd.f32 %v3753_v48, %v1211_v17  ;;  %v1405_v23 = vadd.f32 %v3753_v48, %v1207_v18  ;;  %1540 = vmax.xlane.f32.xlu0 %v1539_v19  ;;  %1543 = vmax.xlane.f32.xlu1 %v1542_v20  ;;  %v1475_v24 = vsel %vm1427_vm6, %v1403_v8, %v1451_v15 }
 0x191   :  { %v3873_v29 = vadd.f32 %v1475_v24, %v3774_v63  ;;  %v1476_v30 = vsel %vm1428_vm5, %v1404_v7, %v1452_v12  ;;  %v1545_v50 = vsel %vm1511_vm4, %v3868_v42, -inf }
 0x192   :  { %vm1430_vm7 = vcmp.gt.f32.partialorder %v1406_v21, 0.0  ;;  %v1454_v31 = vmul.f32 0.2, %v1406_v21  ;;  %vm1429_vm8 = vcmp.gt.f32.partialorder %v1405_v23, 0.0  ;;  %v1453_v41 = vmul.f32 0.2, %v1405_v23 }
 0x193   :  { %v1244_v44 = vpop.permute.xlu1 %1243  ;;  %v1240_v49 = vpop.permute.xlu0 %1239  ;;  %v1548_v52 = vsel %vm1511_vm4, %v3873_v29, -inf  ;;  %v3880_v48 = vadd.f32 %v1476_v30, %v3769_v54 }
 0x194   :  { %v1412_v55 = vadd.f32 %v3735_v26, %v1244_v44  ;;  %v1411_v56 = vadd.f32 %v3735_v26, %v1240_v49  ;;  %1546 = vmax.xlane.f32.xlu0 %v1545_v50  ;;  %1549 = vmax.xlane.f32.xlu1 %v1548_v52  ;;  %v1477_v58 = vsel %vm1429_vm8, %v1405_v23, %v1453_v41 }
 0x195   :  { %v3885_v60 = vadd.f32 %v1477_v58, %v3774_v63  ;;  %v1478_v61 = vsel %vm1430_vm7, %v1406_v21, %v1454_v31  ;;  %v1551_v4 = vsel %vm1511_vm4, %v3880_v48, -inf }
 0x196   :  { %vm1436_vm9 = vcmp.gt.f32.partialorder %v1412_v55, 0.0  ;;  %v1460_v28 = vmul.f32 0.2, %v1412_v55  ;;  %vm1435_vm10 = vcmp.gt.f32.partialorder %v1411_v56, 0.0  ;;  %v1459_v1 = vmul.f32 0.2, %v1411_v56 }
 0x197   :  { %v1255_v2 = vpop.permute.xlu1 %1254  ;;  %v1251_v3 = vpop.permute.xlu0 %1250  ;;  %v1554_v6 = vsel %vm1511_vm4, %v3885_v60, -inf  ;;  %v3892_v26 = vadd.f32 %v1478_v61, %v3769_v54 }
 0x198   :  { %v1414_v62 = vadd.f32 %v3749_v43, %v1255_v2  ;;  %v1413_v7 = vadd.f32 %v3749_v43, %v1251_v3  ;;  %1552 = vmax.xlane.f32.xlu0 %v1551_v4  ;;  %1555 = vmax.xlane.f32.xlu1 %v1554_v6  ;;  %v1483_v8 = vsel %vm1435_vm10, %v1411_v56, %v1459_v1 }
 0x199   :  { %v3897_v9 = vadd.f32 %v1483_v8, %v3774_v63  ;;  %v1484_v11 = vsel %vm1436_vm9, %v1412_v55, %v1460_v28  ;;  %v1557_v17 = vsel %vm1511_vm4, %v3892_v26, -inf }
 0x19a   :  { %vm1438_vm11 = vcmp.gt.f32.partialorder %v1414_v62, 0.0  ;;  %v1462_v12 = vmul.f32 0.2, %v1414_v62  ;;  %vm1437_vm12 = vcmp.gt.f32.partialorder %v1413_v7, 0.0  ;;  %v1461_v15 = vmul.f32 0.2, %v1413_v7 }
 0x19b   :  { %v1572_v18 = vsel %vm1511_vm4, %v3897_v9, -inf  ;;  %v3904_v19 = vadd.f32 %v1484_v11, %v3769_v54 }
 0x19c   :  { %1558 = vmax.xlane.f32.xlu0 %v1557_v17  ;;  %1573 = vmax.xlane.f32.xlu1 %v1572_v18  ;;  %v1485_v43 = vsel %vm1437_vm12, %v1413_v7, %v1461_v15  ;;  %v1486_v20 = vsel %vm1438_vm11, %v1414_v62, %v1462_v12 }
 0x19d   :  { %v3907_v21 = vadd.f32 %v1485_v43, %v3774_v63  ;;  %v1575_v23 = vsel %vm1511_vm4, %v3904_v19, -inf  ;;  %v3914_v30 = vadd.f32 %v1486_v20, %v3769_v54 }
 0x19f   :  { %v1578_v24 = vsel %vm1511_vm4, %v3907_v21, -inf  ;;  %v1581_v31 = vsel %vm1511_vm4, %v3914_v30, -inf }
 0x1a0   :  { %1576 = vmax.xlane.f32.xlu0 %v1575_v23  ;;  %1579 = vmax.xlane.f32.xlu1 %v1578_v24 }
 0x1a4   :  { %1582 = vmax.xlane.f32.xlu0 %v1581_v31 }
 0x201   :  { %v1565_v41 = vpop.xlane.xlu0 %1564  ;;  %v1562_v44 = vpop.xlane.xlu1 %1561 }
 0x202   :  { %v1601_v63 = vsub.f32 %v3779_v13, %v1565_v41  ;;  %v1600_v49 = vsub.f32 %v3782_v14, %v1562_v44 }
 0x204   :  { %v1642_v50 = vmul.f32 1.442695, %v1601_v63  ;;  %v1640_v52 = vmul.f32 1.442695, %v1600_v49 }
 0x205   :  { %v1571_v55 = vpop.xlane.xlu0 %1570 }
 0x206   :  { %3417 = vpow2.f32 %v1642_v50  ;;  %v1603_v56 = vsub.f32 %v3791_v25, %v1571_v55 }
 0x207   :  { %3419 = vpow2.f32 %v1640_v52  ;;  %v1568_v54 = vpop.xlane.xlu1 %1567 }
 0x208   :  { %v1646_v58 = vmul.f32 1.442695, %v1603_v56  ;;  %v1602_v61 = vsub.f32 %v3796_v47, %v1568_v54 }
 0x209   :  { %v1514_v28 = vpop.xlane.xlu0 %1513 }
 0x20a   :  { %3421 = vpow2.f32 %v1646_v58  ;;  %v1644_v1 = vmul.f32 1.442695, %v1602_v61  ;;  %v1584_v2 = vsub.f32 %v3803_v57, %v1514_v28 }
 0x20c   :  { %3423 = vpow2.f32 %v1644_v1  ;;  %v1608_v13 = vmul.f32 1.442695, %v1584_v2 }
 0x20d   :  { %v1517_v3 = vpop.xlane.xlu1 %1516  ;;  %v1520_v14 = vpop.xlane.xlu0 %1519 }
 0x20e   :  { %3425 = vpow2.f32 %v1608_v13  ;;  %v1585_v4 = vsub.f32 %v3813_v5, %v1517_v3  ;;  %v1586_v6 = vsub.f32 %v3808_v22, %v1520_v14 }
 0x210   :  { %v3925_v25 = vpop.eup %3417  ;;  %v1610_v62 = vmul.f32 1.442695, %v1585_v4  ;;  %v1612_v7 = vmul.f32 1.442695, %v1586_v6 }
 0x211   :  { %v3927_v8 = vpop.eup %3419  ;;  %v1526_v47 = vpop.xlane.xlu1 %1525  ;;  %v1707_v57 = vsel %vm1511_vm4, %v3925_v25, 0.0 }
 0x212   :  { %v1523_v11 = vpop.xlane.xlu0 %1522  ;;  %3427 = vpow2.f32 %v1610_v62  ;;  %v1588_v12 = vsub.f32 %v3825_v16, %v1526_v47  ;;  %1708 = vadd.xlane.f32.xlu0 %v1707_v57  ;;  %v1704_v22 = vsel %vm1511_vm4, %v3927_v8, 0.0 }
 0x213   :  { %v1587_v15 = vsub.f32 %v3820_v32, %v1523_v11  ;;  %3429 = vpow2.f32 %v1612_v7  ;;  %1705 = vadd.xlane.f32.xlu1 %v1704_v22 }
 0x214   :  { %v3935_v5 = vpop.eup %3421  ;;  %v1616_v17 = vmul.f32 1.442695, %v1588_v12 }
 0x215   :  { %v1614_v18 = vmul.f32 1.442695, %v1587_v15  ;;  %v1532_v20 = vpop.xlane.xlu1 %1531  ;;  %v1713_v23 = vsel %vm1511_vm4, %v3935_v5, 0.0 }
 0x216   :  { %v1529_v43 = vpop.xlane.xlu0 %1528  ;;  %v3939_v24 = vpop.eup %3423  ;;  %3431 = vpow2.f32 %v1616_v17  ;;  %v1590_v16 = vsub.f32 %v3837_v36, %v1532_v20  ;;  %1714 = vadd.xlane.f32.xlu0 %v1713_v23 }
 0x217   :  { %v1589_v32 = vsub.f32 %v3832_v37, %v1529_v43  ;;  %3433 = vpow2.f32 %v1614_v18  ;;  %v1710_v31 = vsel %vm1511_vm4, %v3939_v24, 0.0 }
 0x218   :  { %v3945_v41 = vpop.eup %3425  ;;  %v1620_v63 = vmul.f32 1.442695, %v1590_v16  ;;  %1711 = vadd.xlane.f32.xlu1 %v1710_v31 }
 0x219   :  { %v1618_v44 = vmul.f32 1.442695, %v1589_v32  ;;  %v1538_v50 = vpop.xlane.xlu1 %1537  ;;  %v1656_v52 = vsel %vm1511_vm4, %v3945_v41, 0.0 }
 0x21a   :  { %v1535_v49 = vpop.xlane.xlu0 %1534  ;;  %v1592_v36 = vsub.f32 %v3849_v0, %v1538_v50 }
 0x21b   :  { %3435 = vpow2.f32 %v1618_v44  ;;  %v1591_v37 = vsub.f32 %v3844_v35, %v1535_v49 }
 0x21c   :  { %3437 = vpow2.f32 %v1620_v63  ;;  %v3951_v55 = vpop.eup %3427  ;;  %v1624_v54 = vmul.f32 1.442695, %v1592_v36  ;;  %1657 = vadd.xlane.f32.xlu1 %v1656_v52 }
 0x21d   :  { %v1622_v56 = vmul.f32 1.442695, %v1591_v37  ;;  %v3953_v58 = vpop.eup %3429  ;;  %v1544_v28 = vpop.xlane.xlu1 %1543  ;;  %v1659_v1 = vsel %vm1511_vm4, %v3951_v55, 0.0 }
 0x21e   :  { %v1541_v61 = vpop.xlane.xlu0 %1540  ;;  %v1594_v35 = vsub.f32 %v3861_v10, %v1544_v28  ;;  %1660 = vadd.xlane.f32.xlu0 %v1659_v1  ;;  %v1662_v0 = vsel %vm1511_vm4, %v3953_v58, 0.0 }
 0x21f   :  { %3439 = vpow2.f32 %v1622_v56  ;;  %v1593_v2 = vsub.f32 %v3856_v38, %v1541_v61 }
 0x220   :  { %3441 = vpow2.f32 %v1624_v54  ;;  %v3961_v13 = vpop.eup %3431  ;;  %v1628_v14 = vmul.f32 1.442695, %v1594_v35  ;;  %1663 = vadd.xlane.f32.xlu1 %v1662_v0 }
 0x221   :  { %v1626_v3 = vmul.f32 1.442695, %v1593_v2  ;;  %v3963_v4 = vpop.eup %3433  ;;  %v1550_v62 = vpop.xlane.xlu1 %1549  ;;  %v1668_v7 = vsel %vm1511_vm4, %v3961_v13, 0.0 }
 0x222   :  { %v1547_v6 = vpop.xlane.xlu0 %1546  ;;  %v1596_v10 = vsub.f32 %v3873_v29, %v1550_v62  ;;  %v1665_v47 = vsel %vm1511_vm4, %v3963_v4, 0.0 }
 0x223   :  { %3443 = vpow2.f32 %v1626_v3  ;;  %v1595_v38 = vsub.f32 %v3868_v42, %v1547_v6  ;;  %1666 = vadd.xlane.f32.xlu0 %v1665_v47 }
 0x224   :  { %3445 = vpow2.f32 %v1628_v14  ;;  %v1632_v12 = vmul.f32 1.442695, %v1596_v10  ;;  %1669 = vadd.xlane.f32.xlu1 %v1668_v7 }
 0x225   :  { %v3971_v11 = vpop.eup %3435  ;;  %v1630_v57 = vmul.f32 1.442695, %v1595_v38  ;;  %v1556_v17 = vpop.xlane.xlu1 %1555 }
 0x226   :  { %v3973_v15 = vpop.eup %3437  ;;  %v1553_v22 = vpop.xlane.xlu0 %1552  ;;  %v1671_v18 = vsel %vm1511_vm4, %v3971_v11, 0.0  ;;  %v1598_v29 = vsub.f32 %v3885_v60, %v1556_v17 }
 0x227   :  { %3447 = vpow2.f32 %v1630_v57  ;;  %v1597_v42 = vsub.f32 %v3880_v48, %v1553_v22  ;;  %v1674_v43 = vsel %vm1511_vm4, %v3973_v15, 0.0  ;;  %1672 = vadd.xlane.f32.xlu0 %v1671_v18 }
 0x228   :  { %3449 = vpow2.f32 %v1632_v12  ;;  %v1636_v32 = vmul.f32 1.442695, %v1598_v29  ;;  %1675 = vadd.xlane.f32.xlu1 %v1674_v43 }
 0x229   :  { %v3981_v20 = vpop.eup %3439  ;;  %v1634_v23 = vmul.f32 1.442695, %v1597_v42  ;;  %v1574_v44 = vpop.xlane.xlu1 %1573 }
 0x22a   :  { %v3983_v16 = vpop.eup %3441  ;;  %v1559_v31 = vpop.xlane.xlu0 %1558  ;;  %v1677_v63 = vsel %vm1511_vm4, %v3981_v20, 0.0  ;;  %v1604_v60 = vsub.f32 %v3897_v9, %v1574_v44 }
 0x22b   :  { %3451 = vpow2.f32 %v1634_v23  ;;  %v1599_v48 = vsub.f32 %v3892_v26, %v1559_v31  ;;  %v1680_v49 = vsel %vm1511_vm4, %v3983_v16, 0.0  ;;  %1678 = vadd.xlane.f32.xlu0 %v1677_v63 }
 0x22c   :  { %3453 = vpow2.f32 %v1636_v32  ;;  %v1648_v37 = vmul.f32 1.442695, %v1604_v60  ;;  %1681 = vadd.xlane.f32.xlu1 %v1680_v49 }
 0x22d   :  { %v3991_v50 = vpop.eup %3443  ;;  %v1638_v52 = vmul.f32 1.442695, %v1599_v48  ;;  %v1580_v54 = vpop.xlane.xlu1 %1579 }
 0x22e   :  { %v3993_v36 = vpop.eup %3445  ;;  %v1577_v56 = vpop.xlane.xlu0 %1576  ;;  %v1683_v61 = vsel %vm1511_vm4, %v3991_v50, 0.0  ;;  %v1606_v9 = vsub.f32 %v3907_v21, %v1580_v54 }
 0x22f   :  { %3455 = vpow2.f32 %v1638_v52  ;;  %v1605_v26 = vsub.f32 %v3904_v19, %v1577_v56  ;;  %v1686_v28 = vsel %vm1511_vm4, %v3993_v36, 0.0  ;;  %1684 = vadd.xlane.f32.xlu0 %v1683_v61 }
 0x230   :  { %3457 = vpow2.f32 %v1648_v37  ;;  %v1652_v35 = vmul.f32 1.442695, %v1606_v9  ;;  %1687 = vadd.xlane.f32.xlu1 %v1686_v28 }
 0x231   :  { %v4001_v1 = vpop.eup %3447  ;;  %v1650_v2 = vmul.f32 1.442695, %v1605_v26 }
 0x232   :  { %v4003_v0 = vpop.eup %3449  ;;  %v1583_v3 = vpop.xlane.xlu0 %1582  ;;  %v1689_v14 = vsel %vm1511_vm4, %v4001_v1, 0.0 }
 0x233   :  { %3459 = vpow2.f32 %v1650_v2  ;;  %v1607_v19 = vsub.f32 %v3914_v30, %v1583_v3  ;;  %v1692_v21 = vsel %vm1511_vm4, %v4003_v0, 0.0  ;;  %1690 = vadd.xlane.f32.xlu0 %v1689_v14 }
 0x234   :  { %3461 = vpow2.f32 %v1652_v35  ;;  %1693 = vadd.xlane.f32.xlu1 %v1692_v21 }
 0x235   :  { %v4010_v6 = vpop.eup %3451  ;;  %v1654_v62 = vmul.f32 1.442695, %v1607_v19 }
 0x236   :  { %v4012_v7 = vpop.eup %3453  ;;  %v1695_v38 = vsel %vm1511_vm4, %v4010_v6, 0.0 }
 0x237   :  { %3463 = vpow2.f32 %v1654_v62  ;;  %v1698_v10 = vsel %vm1511_vm4, %v4012_v7, 0.0  ;;  %1696 = vadd.xlane.f32.xlu0 %v1695_v38 }
 0x238   :  { %1699 = vadd.xlane.f32.xlu1 %v1698_v10 }
 0x239   :  { %v4018_v30 = vpop.eup %3455 }
 0x23a   :  { %v4020_v47 = vpop.eup %3457  ;;  %v1701_v57 = vsel %vm1511_vm4, %v4018_v30, 0.0 }
 0x23b   :  { %v1716_v12 = vsel %vm1511_vm4, %v4020_v47, 0.0  ;;  %1702 = vadd.xlane.f32.xlu0 %v1701_v57 }
 0x23c   :  { %1717 = vadd.xlane.f32.xlu1 %v1716_v12 }
 0x23d   :  { %v4026_v22 = vpop.eup %3459 }
 0x23e   :  { %v4028_v17 = vpop.eup %3461  ;;  %v1719_v18 = vsel %vm1511_vm4, %v4026_v22, 0.0 }
 0x23f   :  { %v1722_v42 = vsel %vm1511_vm4, %v4028_v17, 0.0  ;;  %1720 = vadd.xlane.f32.xlu0 %v1719_v18 }
 0x240   :  { %1723 = vadd.xlane.f32.xlu1 %v1722_v42 }
 0x241   :  { %v4034_v29 = vpop.eup %3463 }
 0x242   :  { %v1725_v43 = vsel %vm1511_vm4, %v4034_v29, 0.0 }
 0x243   :  { %1726 = vadd.xlane.f32.xlu0 %v1725_v43 }
 0x29f   :  { %v4038_v32 = vpop.xlane.xlu0 %1708 }
 0x2a0   :  { %v1706_v23 = vpop.xlane.xlu1 %1705 }
 0x2a3   :  { %v4042_v44 = vpop.xlane.xlu0 %1714 }
 0x2a5   :  { %v4040_v31 = vpop.xlane.xlu1 %1711 }
 0x2a9   :  { %v1658_v63 = vpop.xlane.xlu1 %1657 }
 0x2aa   :  { %v1728_v48 = vmul.f32 12.0, %v1658_v63 }
 0x2ab   :  { %v1661_v60 = vpop.xlane.xlu0 %1660 }
 0x2ac   :  { %3465 = vrcp.f32 %v1728_v48  ;;  %v1729_v49 = vmul.f32 12.0, %v1661_v60 }
 0x2ad   :  { %v1664_v52 = vpop.xlane.xlu1 %1663 }
 0x2ae   :  { %3467 = vrcp.f32 %v1729_v49  ;;  %v1730_v37 = vmul.f32 12.0, %v1664_v52 }
 0x2b0   :  { %3469 = vrcp.f32 %v1730_v37  ;;  %v1667_v56 = vpop.xlane.xlu0 %1666 }
 0x2b1   :  { %v1731_v54 = vmul.f32 12.0, %v1667_v56  ;;  %v1670_v61 = vpop.xlane.xlu1 %1669 }
 0x2b2   :  { %v1732_v26 = vmul.f32 12.0, %v1670_v61 }
 0x2b3   :  { %3471 = vrcp.f32 %v1731_v54  ;;  %v1744_v54 = vmul.f32 12.0, %v1706_v23 }
 0x2b4   :  { %3473 = vrcp.f32 %v1732_v26  ;;  %v1673_v9 = vpop.xlane.xlu0 %1672 }
 0x2b5   :  { %v1733_v28 = vmul.f32 12.0, %v1673_v9  ;;  %v1676_v2 = vpop.xlane.xlu1 %1675 }
 0x2b6   :  { %v3466_v35 = vpop.eup %3465  ;;  %v1734_v3 = vmul.f32 12.0, %v1676_v2 }
 0x2b7   :  { %3475 = vrcp.f32 %v1733_v28  ;;  %v1776_v14 = vmul.f32 %v3466_v35, %v3945_v41  ;;  %v1745_v28 = vmul.f32 12.0, %v4038_v32 }
 0x2b8   :  { %v3468_v19 = vpop.eup %3467  ;;  %3477 = vrcp.f32 %v1734_v3  ;;  %v1679_v21 = vpop.xlane.xlu0 %1678 }
 0x2b9   :  { %v1735_v62 = vmul.f32 12.0, %v1679_v21  ;;  %3260 = vmatprep.mubr.msk.f32.mxu0 %vm1511_vm4, %v1776_v14  ;;  %v1682_v38 = vpop.xlane.xlu1 %1681  ;;  %v1777_v10 = vmul.f32 %v3468_v19, %v3951_v55 }
 0x2ba   :  { %v3470_v57 = vpop.eup %3469  ;;  %v1736_v12 = vmul.f32 12.0, %v1682_v38 }
 0x2bb   :  { %3479 = vrcp.f32 %v1735_v62  ;;  %3261 = vmatmul.mubr.msk.f32.vlgmr.msra.gmra.mrb[14].mxu0 %vm1511_vm4, %v1777_v10  ;;  %v1778_v18 = vmul.f32 %v3470_v57, %v3953_v58 }
 0x2bc   :  { %3481 = vrcp.f32 %v1736_v12  ;;  %v1685_v42 = vpop.xlane.xlu0 %1684  ;;  %3375 = vmatpush3.bf16.msra.mxu0 %v3700_v34 }
 0x2bd   :  { %v3472_v41 = vpop.eup %3471  ;;  %v1737_v43 = vmul.f32 12.0, %v1685_v42  ;;  %3267 = vmatprep.mubr.msk.f32.mxu1 %vm1511_vm4, %v1778_v18  ;;  %v1688_v63 = vpop.xlane.xlu1 %1687  ;;  %3381 = vmatprep.subr.bf16.mxu0 %v3705_v40 }
 0x2be   :  { %v3474_v48 = vpop.eup %3473  ;;  %v1738_v55 = vmul.f32 12.0, %v1688_v63  ;;  %v1779_v60 = vmul.f32 %v3472_v41, %v3963_v4 }
 0x2bf   :  { %3483 = vrcp.f32 %v1737_v43  ;;  %v1780_v49 = vmul.f32 %v3474_v48, %v3961_v13 }
 0x2c0   :  { %3485 = vrcp.f32 %v1738_v55  ;;  %v1691_v58 = vpop.xlane.xlu0 %1690  ;;  %3268 = vmatmul.mubr.msk.f32.vlgmr.msra.gmra.mrb[14].mxu1 %vm1511_vm4, %v1779_v60 }
 0x2c1   :  { %v3476_v52 = vpop.eup %3475  ;;  %v1739_v34 = vmul.f32 12.0, %v1691_v58  ;;  %3274 = vmatprep.mubr.msk.f32.mxu0 %vm1511_vm4, %v1780_v49  ;;  %3379 = vmatpush3.bf16.msra.mxu1 %v3695_v27  ;;  %v1694_v37 = vpop.xlane.xlu1 %1693 }
 0x2c2   :  { %v3478_v56 = vpop.eup %3477  ;;  %v1740_v61 = vmul.f32 12.0, %v1694_v37  ;;  %3385 = vmatprep.subr.bf16.mxu1 %v3698_v33  ;;  %v1781_v4 = vmul.f32 %v3476_v52, %v3971_v11  ;;  %v1746_v11 = vmul.f32 12.0, %v4040_v31 }
 0x2c3   :  { %3487 = vrcp.f32 %v1739_v34  ;;  %v1782_v13 = vmul.f32 %v3478_v56, %v3973_v15 }
 0x2c4   :  { %3489 = vrcp.f32 %v1740_v61  ;;  %v1697_v26 = vpop.xlane.xlu0 %1696  ;;  %3275 = vmatmul.mubr.msk.f32.vlgmr.msra.gmra.mrb[16].mxu0 %vm1511_vm4, %v1781_v4 }
 0x2c5   :  { %v3480_v9 = vpop.eup %3479  ;;  %v1741_v2 = vmul.f32 12.0, %v1697_v26  ;;  %3281 = vmatprep.mubr.msk.f32.mxu1 %vm1511_vm4, %v1782_v13  ;;  %3383 = vmatpush3.bf16.msra.mxu0 %v3705_v40  ;;  %v1700_v27 = vpop.xlane.xlu1 %1699  ;;  %3491 = vrcp.f32 %v1744_v54  ;;  %v1747_v40 = vmul.f32 12.0, %v4042_v44 }
 0x2c6   :  { %v3482_v23 = vpop.eup %3481  ;;  %v1742_v35 = vmul.f32 12.0, %v1700_v27  ;;  %3389 = vmatprep.subr.bf16.mxu0 %v3709_v46  ;;  %v1783_v15 = vmul.f32 %v3480_v9, %v3981_v20 }
 0x2c7   :  { %3493 = vrcp.f32 %v1741_v2  ;;  %v1784_v3 = vmul.f32 %v3482_v23, %v3983_v16 }
 0x2c8   :  { %3495 = vrcp.f32 %v1742_v35  ;;  %v1703_v32 = vpop.xlane.xlu0 %1702  ;;  %3282 = vmatmul.mubr.msk.f32.vlgmr.msra.gmra.mrb[16].mxu1 %vm1511_vm4, %v1783_v15 }
 0x2c9   :  { %v3484_v14 = vpop.eup %3483  ;;  %3497 = vrcp.f32 %v1745_v28  ;;  %v1743_v19 = vmul.f32 12.0, %v1703_v32  ;;  %3288 = vmatprep.mubr.msk.f32.mxu0 %vm1511_vm4, %v1784_v3  ;;  %3387 = vmatpush3.bf16.msra.mxu1 %v3698_v33  ;;  %v1718_v31 = vpop.xlane.xlu1 %1717 }
 0x2ca   :  { %v3486_v21 = vpop.eup %3485  ;;  %3499 = vrcp.f32 %v1746_v11  ;;  %v1748_v20 = vmul.f32 12.0, %v1718_v31  ;;  %3393 = vmatprep.subr.bf16.mxu1 %v3703_v39  ;;  %v1785_v16 = vmul.f32 %v3484_v14, %v3991_v50 }
 0x2cb   :  { %3501 = vrcp.f32 %v1743_v19  ;;  %v1786_v62 = vmul.f32 %v3486_v21, %v3993_v36 }
 0x2cc   :  { %3503 = vrcp.f32 %v1748_v20  ;;  %v1721_v38 = vpop.xlane.xlu0 %1720  ;;  %3289 = vmatmul.mubr.msk.f32.vlgmr.msra.gmra.mrb[18].mxu0 %vm1511_vm4, %v1785_v16 }
 0x2cd   :  { %v3488_v44 = vpop.eup %3487  ;;  %3505 = vrcp.f32 %v1747_v40  ;;  %v1749_v10 = vmul.f32 12.0, %v1721_v38  ;;  %3295 = vmatprep.mubr.msk.f32.mxu1 %vm1511_vm4, %v1786_v62  ;;  %3391 = vmatpush3.bf16.msra.mxu0 %v3709_v46  ;;  %v1724_v33 = vpop.xlane.xlu1 %1723 }
 0x2ce   :  { %v3490_v57 = vpop.eup %3489  ;;  %v1750_v12 = vmul.f32 12.0, %v1724_v33  ;;  %3397 = vmatprep.subr.bf16.mxu0 %v3713_v53  ;;  %v1787_v50 = vmul.f32 %v3488_v44, %v4001_v1 }
 0x2cf   :  { %3507 = vrcp.f32 %v1749_v10  ;;  %v1788_v36 = vmul.f32 %v3490_v57, %v4003_v0  ;;  %v3492_v18 = vpop.eup %3491 }
 0x2d0   :  { %3509 = vrcp.f32 %v1750_v12  ;;  %v1727_v42 = vpop.xlane.xlu0 %1726  ;;  %3296 = vmatmul.mubr.msk.f32.vlgmr.msra.gmra.mrb[18].mxu1 %vm1511_vm4, %v1787_v50  ;;  %v1792_v55 = vmul.f32 %v3492_v18, %v3927_v8 }
 0x2d1   :  { %v3494_v41 = vpop.eup %3493  ;;  %v1751_v43 = vmul.f32 12.0, %v1727_v42  ;;  %3302 = vmatprep.mubr.msk.f32.mxu0 %vm1511_vm4, %v1788_v36  ;;  %3395 = vmatpush3.bf16.msra.mxu1 %v3703_v39 }
 0x2d2   :  { %v3496_v46 = vpop.eup %3495  ;;  %3401 = vmatprep.subr.bf16.mxu1 %v3707_v45  ;;  %v1789_v63 = vmul.f32 %v3494_v41, %v4010_v6 }
 0x2d3   :  { %v3498_v1 = vpop.eup %3497  ;;  %3511 = vrcp.f32 %v1751_v43  ;;  %v1790_v0 = vmul.f32 %v3496_v46, %v4012_v7 }
 0x2d4   :  { %v3500_v48 = vpop.eup %3499  ;;  %3303 = vmatmul.mubr.msk.f32.vlgmr.msra.gmra.mrb[20].mxu0 %vm1511_vm4, %v1789_v63  ;;  %v1793_v49 = vmul.f32 %v3498_v1, %v3925_v25 }
 0x2d5   :  { %v3502_v60 = vpop.eup %3501  ;;  %3309 = vmatprep.mubr.msk.f32.mxu1 %vm1511_vm4, %v1790_v0  ;;  %3399 = vmatpush3.bf16.msra.mxu0 %v3713_v53  ;;  %v1794_v8 = vmul.f32 %v3500_v48, %v3939_v24 }
 0x2d6   :  { %v3504_v39 = vpop.eup %3503  ;;  %3316 = vmatprep.mubr.msk.f32.mxu0 %vm1511_vm4, %v1792_v55  ;;  %3405 = vmatprep.subr.bf16.mxu0 %v3717_v59  ;;  %v1791_v6 = vmul.f32 %v3502_v60, %v4018_v30 }
 0x2d7   :  { %v3506_v7 = vpop.eup %3505  ;;  %v1796_v58 = vmul.f32 %v3504_v39, %v4020_v47 }
 0x2d8   :  { %3310 = vmatmul.mubr.msk.f32.vlgmr.msra.gmra.mrb[20].mxu1 %vm1511_vm4, %v1791_v6  ;;  %3317 = vmatmul.mubr.msk.f32.vlgmr.msra.gmra.mrb[22].mxu0 %vm1511_vm4, %v1793_v49  ;;  %v1795_v25 = vmul.f32 %v3506_v7, %v3935_v5  ;;  %v2829_v5 = vld [vmem:[%s4172_s6] sm:$0xff] }
 0x2d9   :  { %v3508_v52 = vpop.eup %3507  ;;  %3403 = vmatpush3.bf16.msra.mxu1 %v3707_v45  ;;  %3407 = vmatpush3.bf16.msra.mxu0 %v3717_v59 }
 0x2da   :  { %v3510_v53 = vpop.eup %3509  ;;  %3323 = vmatprep.mubr.msk.f32.mxu1 %vm1511_vm4, %v1794_v8  ;;  %3330 = vmatprep.mubr.msk.f32.mxu0 %vm1511_vm4, %v1796_v58  ;;  %v1797_v30 = vmul.f32 %v3508_v52, %v4026_v22 }
 0x2db   :  { %3409 = vmatprep.subr.bf16.mxu1 %v3711_v51  ;;  %v1798_v47 = vmul.f32 %v3510_v53, %v4028_v17  ;;  %3340 = vmatprep.subr.mxu0 %v2829_v5 }
 0x2dc   :  { %3324 = vmatmul.mubr.msk.f32.vlgmr.msra.gmra.mrb[22].mxu1 %vm1511_vm4, %v1795_v25  ;;  %3331 = vmatmul.mubr.msk.f32.vlgmr.msra.gmra.mrb[24].mxu0 %vm1511_vm4, %v1797_v30 }
 0x2dd   :  { %v3512_v45 = vpop.eup %3511  ;;  %3411 = vmatpush3.bf16.msra.mxu1 %v3711_v51  ;;  %3337 = vmatprep.mubr.msk.f32.mxu1 %vm1511_vm4, %v1798_v47 }
 0x2de   :  { %v1799_v59 = vmul.f32 %v3512_v45, %v4034_v29  ;;  %3341 = vmatpush3.msra.mxu0 %v2829_v5 }
 0x2e0   :  { %3338 = vmatmul.mubr.msk.f32.vlgmr.msra.gmra.mrb[24].mxu1 %vm1511_vm4, %v1799_v59 }
 0x38e   :  { %v3262_v24 = vpop.f32.mrb[14].mxu0 }
 0x38f   :  { %v1872_v22 = vpop.f32.mrb[15].mxu0  ;;  %v2795_v34 = vsel %vm51_vm0, %v3262_v24, 0.0 }
 0x390   :  { %v2772_v56 = vsel %vm51_vm0, %v1872_v22, 0.0 }
 0x393   :  { %v3269_v17 = vpop.f32.mrb[14].mxu1 }
 0x394   :  { %v2796_v37 = vsel %vm51_vm0, %v3269_v17, 0.0  ;;  %v1953_v51 = vpop.f32.mrb[15].mxu1  ;;  %v3076_v17 = vld [vmem:[%s4173_s5] ss:$0 sm:$0xff] }
 0x395   :  { %v2797_v54 = vadd.f32 %v2796_v37, %v2795_v34  ;;  %v2773_v29 = vsel %vm51_vm0, %v1953_v51, 0.0 }
 0x396   :  { %v2774_v61 = vadd.f32 %v2773_v29, %v2772_v56 }
 0x397   :  { %v3276_v4 = vpop.f32.mrb[16].mxu0 }
 0x398   :  { %v2798_v13 = vsel %vm51_vm0, %v3276_v4, 0.0  ;;  %v2034_v26 = vpop.f32.mrb[17].mxu0 }
 0x399   :  { %v2799_v9 = vadd.f32 %v2798_v13, %v2797_v54  ;;  %v2775_v28 = vsel %vm51_vm0, %v2034_v26, 0.0  ;;  %v2920_v13 = vld [vmem:[%s4174_s8] sm:$0xff]  ;;  %v2921_v26 = vld [vmem:[%s4174_s8 + $0x8] sm:$0xff] }
 0x39a   :  { %v2776_v2 = vadd.f32 %v2775_v28, %v2774_v61  ;;  %v3077_v28 = vld [vmem:[%s4175_s7] ss:$0 sm:$0xff] }
 0x39b   :  { %v3283_v27 = vpop.f32.mrb[16].mxu1 }
 0x39c   :  { %v2800_v23 = vsel %vm51_vm0, %v3283_v27, 0.0  ;;  %v2115_v11 = vpop.f32.mrb[17].mxu1 }
 0x39d   :  { %v2801_v35 = vadd.f32 %v2800_v23, %v2799_v9  ;;  %v2777_v15 = vsel %vm51_vm0, %v2115_v11, 0.0  ;;  %v3412_v9 = vpack.c.bf16 %v2921_v26, %v2920_v13 }
 0x39e   :  { %v2778_v3 = vadd.f32 %v2777_v15, %v2776_v2 }
 0x39f   :  { %v3290_v32 = vpop.f32.mrb[18].mxu0  ;;  %3413 = vmatprep.subr.bf16.mxu1 %v3412_v9 }
 0x3a0   :  { %v2802_v14 = vsel %vm51_vm0, %v3290_v32, 0.0  ;;  %v2196_v40 = vpop.f32.mrb[19].mxu0  ;;  %3415 = vmatpush3.bf16.msra.mxu1 %v3412_v9 }
 0x3a1   :  { %v2803_v19 = vadd.f32 %v2802_v14, %v2801_v35  ;;  %v2779_v31 = vsel %vm51_vm0, %v2196_v40, 0.0 }
 0x3a2   :  { %v2780_v21 = vadd.f32 %v2779_v31, %v2778_v3  ;;  %v3080_v3 = vld [vmem:[%s4176_s9] ss:$0 sm:$0xff] }
 0x3a3   :  { %v3297_v20 = vpop.f32.mrb[18].mxu1 }
 0x3a4   :  { %v2804_v16 = vsel %vm51_vm0, %v3297_v20, 0.0  ;;  %v2277_v62 = vpop.f32.mrb[19].mxu1 }
 0x3a5   :  { %v2805_v38 = vadd.f32 %v2804_v16, %v2803_v19  ;;  %v2781_v44 = vsel %vm51_vm0, %v2277_v62, 0.0 }
 0x3a6   :  { %v2782_v10 = vadd.f32 %v2781_v44, %v2780_v21 }
 0x3a7   :  { %v3304_v33 = vpop.f32.mrb[20].mxu0 }
 0x3a8   :  { %v2806_v57 = vsel %vm51_vm0, %v3304_v33, 0.0  ;;  %v2358_v12 = vpop.f32.mrb[21].mxu0 }
 0x3a9   :  { %v2807_v50 = vadd.f32 %v2806_v57, %v2805_v38  ;;  %v2783_v36 = vsel %vm51_vm0, %v2358_v12, 0.0 }
 0x3aa   :  { %v2784_v18 = vadd.f32 %v2783_v36, %v2782_v10 }
 0x3ab   :  { %v3311_v42 = vpop.f32.mrb[20].mxu1  ;;  %v3318_v41 = vpop.f32.mrb[22].mxu0 }
 0x3ac   :  { %v2808_v43 = vsel %vm51_vm0, %v3311_v42, 0.0  ;;  %v2439_v46 = vpop.f32.mrb[21].mxu1  ;;  %v2520_v63 = vpop.f32.mrb[23].mxu0  ;;  %v2810_v48 = vsel %vm51_vm0, %v3318_v41, 0.0 }
 0x3ad   :  { %v2809_v1 = vadd.f32 %v2808_v43, %v2807_v50  ;;  %v2785_v0 = vsel %vm51_vm0, %v2439_v46, 0.0  ;;  %v2787_v39 = vsel %vm51_vm0, %v2520_v63, 0.0 }
 0x3ae   :  { %v2786_v55 = vadd.f32 %v2785_v0, %v2784_v18 }
 0x3af   :  { %v2811_v60 = vadd.f32 %v2810_v48, %v2809_v1  ;;  %v3325_v6 = vpop.f32.mrb[22].mxu1  ;;  %v3332_v49 = vpop.f32.mrb[24].mxu0 }
 0x3b0   :  { %v2788_v7 = vadd.f32 %v2787_v39, %v2786_v55  ;;  %v2812_v58 = vsel %vm51_vm0, %v3325_v6, 0.0  ;;  %v2601_v8 = vpop.f32.mrb[23].mxu1  ;;  %v2682_v52 = vpop.f32.mrb[25].mxu0  ;;  %v2814_v30 = vsel %vm51_vm0, %v3332_v49, 0.0 }
 0x3b1   :  { %v2813_v53 = vadd.f32 %v2812_v58, %v2811_v60  ;;  %v2789_v25 = vsel %vm51_vm0, %v2601_v8, 0.0  ;;  %v2791_v59 = vsel %vm51_vm0, %v2682_v52, 0.0 }
 0x3b2   :  { %v2790_v47 = vadd.f32 %v2789_v25, %v2788_v7 }
 0x3b3   :  { %v2815_v45 = vadd.f32 %v2814_v30, %v2813_v53  ;;  %v3339_v5 = vpop.f32.mrb[24].mxu1 }
 0x3b4   :  { %v2792_v24 = vadd.f32 %v2791_v59, %v2790_v47  ;;  %v2816_v22 = vsel %vm51_vm0, %v3339_v5, 0.0  ;;  %v2763_v34 = vpop.f32.mrb[25].mxu1 }
 0x3b5   :  { %v2817_v37 = vadd.f32 %v2816_v22, %v2815_v45  ;;  %v2793_v51 = vsel %vm51_vm0, %v2763_v34, 0.0 }
 0x3b6   :  { %v2794_v56 = vadd.f32 %v2793_v51, %v2792_v24 }
 0x3b7   :  { %v2826_v54 = vadd.f32 %v3076_v17, %v2817_v37 }
 0x3b8   :  { %v2825_v29 = vadd.f32 %v3076_v17, %v2794_v56 }
 0x3b9   :  { %v2828_v4 = vmax.f32 %v2826_v54, 0.0 }
 0x3ba   :  { %v2827_v61 = vmax.f32 %v2825_v29, 0.0 }
 0x3bc   :  { %3342 = vmatprep.mubr.msk.f32.mxu0 %vm51_vm0, %v2827_v61 }
 0x3bd   :  { %3343 = vmatmul.mubr.msk.f32.vlgmr.msra.gmra.mrb[26].mxu0 %vm51_vm0, %v2828_v4 }
 0x490   :  { %v3344_v2 = vpop.f32.mrb[26].mxu0 }
 0x491   :  { %v2915_v27 = vadd.f32 %v3344_v2, %v3077_v28  ;;  %v2909_v23 = vpop.f32.mrb[27].mxu0 }
 0x492   :  { %v2910_v11 = vadd.f32 %v3077_v28, %v2909_v23 }
 0x493   :  { %v2919_v15 = vmax.f32 %v2915_v27, 0.0 }
 0x494   :  { %v2918_v35 = vmax.f32 %v2910_v11, 0.0 }
 0x496   :  { %3349 = vmatprep.mubr.msk.f32.mxu1 %vm1511_vm4, %v2918_v35 }
 0x497   :  { %3350 = vmatmul.mubr.msk.f32.vlgmr.msra.gmra.mrb[26].mxu1 %vm1511_vm4, %v2919_v15 }
 0x56a   :  { %v3351_v32 = vpop.f32.mrb[26].mxu1 }
 0x56b   :  { %v3007_v14 = vadd.f32 %v3351_v32, %v3080_v3  ;;  %v3001_v40 = vpop.f32.mrb[27].mxu1 }
 0x56c   :  { %v3002_v19 = vadd.f32 %v3080_v3, %v3001_v40 }
 0x56d   :  { %v3011_v31 = vadd.f32 %v3007_v14, %v2828_v4 }
 0x56e   :  { %v3010_v21 = vadd.f32 %v3002_v19, %v2827_v61 }
 0x56f   :  { %v3013_v20 = vmax.f32 %v3011_v31, 0.0 }
 0x570   :  { %v3012_v16 = vmax.f32 %v3010_v21, 0.0 }
 0x571   :  { %3015 = vst.msk [vmem:[%s4177_s10 + $0x8] sm:$0xff] %vm51_vm0, %v3013_v20 }
 0x572   :  { %3014 = vst.msk [vmem:[%s4177_s10] sm:$0xff] %vm51_vm0, %v3012_v16 }

</bundles_post_ra>
